<compile_context>
chip_gen: v7x
topology: tpu7x:2x2x1
jax: 0.10.0
libtpu: 0.0.40
codegen_flags: <defaults>
</compile_context>

<pallas_src>
import functools

import jax
import jax.numpy as jnp
from jax.experimental import pallas as pl
from jax.experimental.pallas import tpu as pltpu

_K_IN = 784     # fc1 in_features  (1*28*28)
_H = 32         # fc1 out_features
_N_OUT = 10     # fc2 out_features
_N_PAD = 128    # lane-dense output width


def _round_up(x, m):
    return (x + m - 1) // m * m


def _dense_mlp_kernel(x_ref, w1_ref, b1_ref, w2_ref, b2_ref, o_ref):
    # fc1: f32 operands, f32 accumulation on the MXU; bias + ReLU on the VPU.
    h = jnp.dot(x_ref[...], w1_ref[...], preferred_element_type=jnp.float32)
    h = jnp.maximum(h + b1_ref[...], 0.0)
    # fc2: tiny matmul into a lane-dense 128-wide block (cols >= 10 are zero
    # because w2/b2 are zero-padded in the wrapper).
    y = jnp.dot(h, w2_ref[...], preferred_element_type=jnp.float32)
    o_ref[...] = (y + b2_ref[...]).astype(o_ref.dtype)


def _choose_batch_tiling(B, block_b):
    """Near-equal batch tiles; >= 2 (even) tiles when there is enough work."""
    n = pl.cdiv(B, block_b)
    if B >= 16:
        n = max(n, 2)          # give both v7x TensorCores at least one tile
    if n > 1 and n % 2:
        n += 1                 # even tile count -> balanced megacore split
    if n == 1:
        return B, 1            # single tile == full array: legal, zero padding
    tb = _round_up(pl.cdiv(B, n), 8)
    n = pl.cdiv(B, tb)         # rounding tb up may reduce the tile count
    return tb, n


@functools.partial(jax.jit, static_argnames=("block_b",))
def dense_net_forward(x_nchw, w1, b1, w2, b2, *, block_b=2048):
    """Forward pass matching denseNet.forward.

    Args:
      x_nchw: (B, C, H, W) float32 with C*H*W == 784 (or already (B, 784)).
      w1: (32, 784) float32   (PyTorch nn.Linear layout: out, in)
      b1: (32,) float32
      w2: (10, 32) float32
      b2: (10,) float32
      block_b: max batch-tile size (rows per grid step).
    Returns:
      (B, 10) float32 logits.
    """
    B = x_nchw.shape[0]
    x_flat = x_nchw.reshape(B, -1)          # torch.flatten(x, 1); no-op if 2D
    assert x_flat.shape[1] == _K_IN

    tb, n_tiles = _choose_batch_tiling(B, block_b)
    b_pad = tb * n_tiles
    if b_pad != B:
        # < tb garbage rows total (near-equal tiles); sliced off after the call.
        x_flat = jnp.pad(x_flat, ((0, b_pad - B), (0, 0)))

    # Tiny parameter packing (f32 throughout; these stay resident in VMEM).
    w1_t = w1.T.astype(jnp.float32)                           # (784, 32)
    b1_r = b1.reshape(1, _H).astype(jnp.float32)              # (1, 32)
    w2_t = jnp.pad(w2.T.astype(jnp.float32),
                   ((0, 0), (0, _N_PAD - _N_OUT)))            # (32, 128)
    b2_r = jnp.pad(b2.reshape(1, _N_OUT).astype(jnp.float32),
                   ((0, 0), (0, _N_PAD - _N_OUT)))            # (1, 128)

    flops = 2 * b_pad * (_K_IN * _H + _H * _N_PAD)
    bytes_accessed = (b_pad * _K_IN * 4 + b_pad * _N_PAD * 4
                      + _K_IN * _H * 4 + _H * _N_PAD * 4)

    out = pl.pallas_call(
        _dense_mlp_kernel,
        out_shape=jax.ShapeDtypeStruct((b_pad, _N_PAD), jnp.float32),
        grid=(n_tiles,),
        in_specs=[
            pl.BlockSpec((tb, _K_IN), lambda i: (i, 0)),    # x: streamed f32
            pl.BlockSpec((_K_IN, _H), lambda i: (0, 0)),    # w1: resident
            pl.BlockSpec((1, _H), lambda i: (0, 0)),        # b1: resident
            pl.BlockSpec((_H, _N_PAD), lambda i: (0, 0)),   # w2: resident
            pl.BlockSpec((1, _N_PAD), lambda i: (0, 0)),    # b2: resident
        ],
        out_specs=pl.BlockSpec((tb, _N_PAD), lambda i: (i, 0)),
        compiler_params=pltpu.CompilerParams(
            dimension_semantics=("parallel",),   # megacore sharding on v7x
            vmem_limit_bytes=32 << 20,           # block_b=2048 safe on v5e too
        ),
        cost_estimate=pl.CostEstimate(
            flops=flops, transcendentals=0, bytes_accessed=bytes_accessed),
    )(x_flat, w1_t, b1_r, w2_t, b2_r)

    return out[:B, :_N_OUT]


def _init_params(key):
    """Deterministic synthetic parameters with nn.Linear shapes."""
    k1, k2, k3, k4 = jax.random.split(key, 4)
    # Roughly match PyTorch default init scale (uniform +/- 1/sqrt(fan_in)).
    w1 = jax.random.uniform(k1, (32, 784), jnp.float32, -1.0 / 28.0, 1.0 / 28.0)
    b1 = jax.random.uniform(k2, (32,), jnp.float32, -1.0 / 28.0, 1.0 / 28.0)
    lim2 = 1.0 / jnp.sqrt(32.0)
    w2 = jax.random.uniform(k3, (10, 32), jnp.float32, -lim2, lim2)
    b2 = jax.random.uniform(k4, (10,), jnp.float32, -lim2, lim2)
    return w1, b1, w2, b2


if __name__ == "__main__":
    key = jax.random.PRNGKey(0)
    k_x, k_p = jax.random.split(key)

    # Input consistent with the module: flatten(x, 1) must give 784 features.
    x = jax.random.normal(k_x, (2, 1, 28, 28), jnp.float32)
    w1, b1, w2, b2 = _init_params(k_p)

    out = jax.block_until_ready(dense_net_forward(x, w1, b1, w2, b2))

    # Reference check in plain JAX (same math as the PyTorch fp32 forward).
    # Kernel is f32 end-to-end; residual difference is only the TPU default
    # MXU matmul precision on both paths, so a modest tolerance is ample.
    x_flat = x.reshape(x.shape[0], -1)
    ref = jnp.maximum(x_flat @ w1.T + b1, 0.0) @ w2.T + b2
    assert out.shape == (2, 10)
    assert jnp.allclose(out, ref, atol=2e-2, rtol=2e-2), float(
        jnp.max(jnp.abs(out - ref)))

    print("KERNEL_OK")
</pallas_src>

<mosaic_0001>
module attributes {stable_mosaic.version = 11 : i64} {
  func.func @_dense_mlp_kernel(%arg0: i32, %arg1: memref<2x784xf32, #tpu.memory_space<vmem>>, %arg2: memref<784x32xf32, #tpu.memory_space<vmem>>, %arg3: memref<1x32xf32, #tpu.memory_space<vmem>>, %arg4: memref<32x128xf32, #tpu.memory_space<vmem>>, %arg5: memref<1x128xf32, #tpu.memory_space<vmem>>, %arg6: memref<2x128xf32, #tpu.memory_space<vmem>>) attributes {dimension_semantics = [#tpu.dimension_semantics<parallel>], iteration_bounds = array<i64: 1>, scalar_prefetch = 0 : i64, scratch_operands = 0 : i64, tpu.core_type = #tpu.core_type<tc>, window_params = [{transform_indices = @transform_0, window_bounds = array<i64: 2, 784>}, {pipeline_mode = #tpu.pipeline_mode<synchronous>, transform_indices = @transform_1, window_bounds = array<i64: 784, 32>}, {pipeline_mode = #tpu.pipeline_mode<synchronous>, transform_indices = @transform_2, window_bounds = array<i64: 1, 32>}, {pipeline_mode = #tpu.pipeline_mode<synchronous>, transform_indices = @transform_3, window_bounds = array<i64: 32, 128>}, {pipeline_mode = #tpu.pipeline_mode<synchronous>, transform_indices = @transform_4, window_bounds = array<i64: 1, 128>}, {transform_indices = @transform_5, window_bounds = array<i64: 2, 128>}]} {
    %c0 = arith.constant 0 : index
    %c0_0 = arith.constant 0 : index
    %0 = vector.load %arg1[%c0, %c0_0] : memref<2x784xf32, #tpu.memory_space<vmem>>, vector<2x784xf32>
    %c0_1 = arith.constant 0 : index
    %c0_2 = arith.constant 0 : index
    %1 = vector.load %arg2[%c0_1, %c0_2] : memref<784x32xf32, #tpu.memory_space<vmem>>, vector<784x32xf32>
    %cst = arith.constant dense<0.000000e+00> : vector<2x32xf32>
    %2 = tpu.matmul %0, %1, %cst {dimension_numbers = #tpu.dot_dimension_numbers<[1], [0], [0], [1], [0, 0, 1, 1], [], []>} : vector<2x784xf32>, vector<784x32xf32>, vector<2x32xf32> -> vector<2x32xf32>
    %c0_3 = arith.constant 0 : index
    %c0_4 = arith.constant 0 : index
    %3 = vector.load %arg3[%c0_3, %c0_4] : memref<1x32xf32, #tpu.memory_space<vmem>>, vector<1x32xf32>
    %4 = vector.broadcast %3 : vector<1x32xf32> to vector<2x32xf32>
    %5 = arith.addf %2, %4 : vector<2x32xf32>
    %cst_5 = arith.constant 0.000000e+00 : f32
    %6 = vector.broadcast %cst_5 : f32 to vector<2x32xf32>
    %7 = arith.maximumf %5, %6 : vector<2x32xf32>
    %c0_6 = arith.constant 0 : index
    %c0_7 = arith.constant 0 : index
    %8 = vector.load %arg4[%c0_6, %c0_7] : memref<32x128xf32, #tpu.memory_space<vmem>>, vector<32x128xf32>
    %cst_8 = arith.constant dense<0.000000e+00> : vector<2x128xf32>
    %9 = tpu.matmul %7, %8, %cst_8 {dimension_numbers = #tpu.dot_dimension_numbers<[1], [0], [0], [1], [0, 0, 1, 1], [], []>} : vector<2x32xf32>, vector<32x128xf32>, vector<2x128xf32> -> vector<2x128xf32>
    %c0_9 = arith.constant 0 : index
    %c0_10 = arith.constant 0 : index
    %10 = vector.load %arg5[%c0_9, %c0_10] : memref<1x128xf32, #tpu.memory_space<vmem>>, vector<1x128xf32>
    %11 = vector.broadcast %10 : vector<1x128xf32> to vector<2x128xf32>
    %12 = arith.addf %9, %11 : vector<2x128xf32>
    %c0_11 = arith.constant 0 : index
    %c0_12 = arith.constant 0 : index
    %13 = vector.load %arg6[%c0_11, %c0_12] : memref<2x128xf32, #tpu.memory_space<vmem>>, vector<2x128xf32>
    tpu.vector_store %arg6[%c0_11, %c0_12], %12 {strides = array<i32>} : memref<2x128xf32, #tpu.memory_space<vmem>>, vector<2x128xf32>,
    return
  }
  func.func @transform_0(%arg0: i32) -> (i32, i32) {
    %c0_i32 = arith.constant 0 : i32
    %c0_i32_0 = arith.constant 0 : i32
    return %arg0, %c0_i32 : i32, i32
  }
  func.func @transform_1(%arg0: i32) -> (i32, i32) {
    %c0_i32 = arith.constant 0 : i32
    %c0_i32_0 = arith.constant 0 : i32
    %c0_i32_1 = arith.constant 0 : i32
    return %c0_i32, %c0_i32_0 : i32, i32
  }
  func.func @transform_2(%arg0: i32) -> (i32, i32) {
    %c0_i32 = arith.constant 0 : i32
    %c0_i32_0 = arith.constant 0 : i32
    %c0_i32_1 = arith.constant 0 : i32
    return %c0_i32, %c0_i32_0 : i32, i32
  }
  func.func @transform_3(%arg0: i32) -> (i32, i32) {
    %c0_i32 = arith.constant 0 : i32
    %c0_i32_0 = arith.constant 0 : i32
    %c0_i32_1 = arith.constant 0 : i32
    return %c0_i32, %c0_i32_0 : i32, i32
  }
  func.func @transform_4(%arg0: i32) -> (i32, i32) {
    %c0_i32 = arith.constant 0 : i32
    %c0_i32_0 = arith.constant 0 : i32
    %c0_i32_1 = arith.constant 0 : i32
    return %c0_i32, %c0_i32_0 : i32, i32
  }
  func.func @transform_5(%arg0: i32) -> (i32, i32) {
    %c0_i32 = arith.constant 0 : i32
    %c0_i32_0 = arith.constant 0 : i32
    return %arg0, %c0_i32 : i32, i32
  }
}

</mosaic_0001>

<bundles_post_ra>
// kernel: dense_net_forward.1
= control target key start
LH: loop header
LB: loop body
LE: loop exit
PB: predicated region body
PF: predicated region fallthrough
CT: control target
= control target key end

     0   :  { %v824_v43 = vmov 1983009808   ;;  %v134_v45 = vlaneseq  ;;  %s1203_s0 = inlined_call_operand.vmem [shape: f32[2,784], index: 0, kind: input, shape index: {}]   ;;  %s1204_s1 = inlined_call_operand.vmem [shape: f32[784,32], index: 1, kind: input, shape index: {}]   ;;  %s1205_s2 = inlined_call_operand.vmem [shape: f32[1,32], index: 2, kind: input, shape index: {}]   ;;  %s1206_s3 = inlined_call_operand.vmem [shape: f32[32,128], index: 3, kind: input, shape index: {}]   ;;  %s1207_s4 = inlined_call_operand.vmem [shape: f32[1,128], index: 4, kind: input, shape index: {}]   ;;  %s1208_s5 = inlined_call_operand.hbm [shape: f32[2,128], index: 5, kind: output, shape index: {}]  }
   0x1   :  { %v39_v0 = vld [vmem:[%s1204_s1 + $0x80] sm:$0xff]  ;;  %v40_v1 = vld [vmem:[%s1204_s1 + $0x88] sm:$0xff]  ;;  %v41_v11 = vld [vmem:[%s1204_s1 + $0x90] sm:$0xff]  ;;  %v132_v44 = vunpack.c.l.s4 %v824_v43 }
   0x2   :  { %v23_v2 = vld [vmem:[%s1204_s1] sm:$0xff]  ;;  %v688_v3 = vpack.c.bf16 %v40_v1, %v39_v0  ;;  %v24_v4 = vld [vmem:[%s1204_s1 + $0x8] sm:$0xff]  ;;  %v42_v13 = vld [vmem:[%s1204_s1 + $0x98] sm:$0xff]  ;;  %v135_v60 = vshrl.u32 %v134_v45, 7 }
   0x3   :  { %v71_v5 = vld [vmem:[%s1204_s1 + $0x180] sm:$0xff]  ;;  %v72_v6 = vld [vmem:[%s1204_s1 + $0x188] sm:$0xff]  ;;  %v690_v7 = vpack.c.bf16 %v24_v4, %v23_v2  ;;  %v25_v14 = vld [vmem:[%s1204_s1 + $0x10] sm:$0xff]  ;;  %v692_v16 = vpack.c.bf16 %v42_v13, %v41_v11  ;;  %v133_v59 = vunpack.c.0.s8 %v132_v44 }
   0x4   :  { %v720_v8 = vpack.c.bf16 %v72_v6, %v71_v5  ;;  %v55_v9 = vld [vmem:[%s1204_s1 + $0x100] sm:$0xff]  ;;  %v56_v10 = vld [vmem:[%s1204_s1 + $0x108] sm:$0xff]  ;;  %689 = vmatprep.subr.bf16.mxu0 %v688_v3  ;;  %v26_v15 = vld [vmem:[%s1204_s1 + $0x18] sm:$0xff] }
   0x5   :  { %v722_v12 = vpack.c.bf16 %v56_v10, %v55_v9  ;;  %691 = vmatpush3.bf16.msra.mxu0 %v690_v7  ;;  %v694_v17 = vpack.c.bf16 %v26_v15, %v25_v14  ;;  %v73_v18 = vld [vmem:[%s1204_s1 + $0x190] sm:$0xff]  ;;  %v74_v19 = vld [vmem:[%s1204_s1 + $0x198] sm:$0xff]  ;;  %v43_v23 = vld [vmem:[%s1204_s1 + $0xa0] sm:$0xff]  ;;  %v1003_v10 = vsub.s32 %v133_v59, %v135_v60 }
   0x6   :  { %721 = vmatprep.subr.bf16.mxu1 %v720_v8  ;;  %v57_v20 = vld [vmem:[%s1204_s1 + $0x110] sm:$0xff]  ;;  %v724_v21 = vpack.c.bf16 %v74_v19, %v73_v18  ;;  %v58_v22 = vld [vmem:[%s1204_s1 + $0x118] sm:$0xff]  ;;  %v44_v24 = vld [vmem:[%s1204_s1 + $0xa8] sm:$0xff]  ;;  %693 = vmatprep.subr.bf16.mxu0 %v692_v16 }
   0x7   :  { %723 = vmatpush3.bf16.msra.mxu1 %v722_v12  ;;  %v726_v25 = vpack.c.bf16 %v58_v22, %v57_v20  ;;  %v696_v26 = vpack.c.bf16 %v44_v24, %v43_v23  ;;  %v27_v27 = vld [vmem:[%s1204_s1 + $0x20] sm:$0xff]  ;;  %v28_v28 = vld [vmem:[%s1204_s1 + $0x28] sm:$0xff]  ;;  %v45_v35 = vld [vmem:[%s1204_s1 + $0xb0] sm:$0xff] }
   0x8   :  { %v75_v29 = vld [vmem:[%s1204_s1 + $0x1a0] sm:$0xff]  ;;  %725 = vmatprep.subr.bf16.mxu1 %v724_v21  ;;  %v76_v30 = vld [vmem:[%s1204_s1 + $0x1a8] sm:$0xff]  ;;  %v698_v33 = vpack.c.bf16 %v28_v28, %v27_v27  ;;  %v46_v36 = vld [vmem:[%s1204_s1 + $0xb8] sm:$0xff] }
   0x9   :  { %v59_v31 = vld [vmem:[%s1204_s1 + $0x120] sm:$0xff]  ;;  %v60_v32 = vld [vmem:[%s1204_s1 + $0x128] sm:$0xff]  ;;  %695 = vmatpush3.bf16.msra.mxu0 %v694_v17  ;;  %v728_v34 = vpack.c.bf16 %v76_v30, %v75_v29  ;;  %v29_v37 = vld [vmem:[%s1204_s1 + $0x30] sm:$0xff]  ;;  %v700_v39 = vpack.c.bf16 %v46_v36, %v45_v35 }
   0xa   :  { %697 = vmatprep.subr.bf16.mxu0 %v696_v26  ;;  %v730_v38 = vpack.c.bf16 %v60_v32, %v59_v31  ;;  %v30_v40 = vld [vmem:[%s1204_s1 + $0x38] sm:$0xff]  ;;  %v77_v41 = vld [vmem:[%s1204_s1 + $0x1b0] sm:$0xff]  ;;  %v47_v49 = vld [vmem:[%s1204_s1 + $0xc0] sm:$0xff] }
   0xb   :  { %727 = vmatpush3.bf16.msra.mxu1 %v726_v25  ;;  %v78_v42 = vld [vmem:[%s1204_s1 + $0x1b8] sm:$0xff]  ;;  %v61_v47 = vld [vmem:[%s1204_s1 + $0x130] sm:$0xff]  ;;  %v48_v50 = vld [vmem:[%s1204_s1 + $0xc8] sm:$0xff]  ;;  %v702_v51 = vpack.c.bf16 %v30_v40, %v29_v37 }
   0xc   :  { %729 = vmatprep.subr.bf16.mxu1 %v728_v34  ;;  %v732_v46 = vpack.c.bf16 %v78_v42, %v77_v41  ;;  %v62_v48 = vld [vmem:[%s1204_s1 + $0x138] sm:$0xff]  ;;  %v79_v52 = vld [vmem:[%s1204_s1 + $0x1c0] sm:$0xff]  ;;  %v80_v53 = vld [vmem:[%s1204_s1 + $0x1c8] sm:$0xff]  ;;  %v704_v55 = vpack.c.bf16 %v48_v50, %v47_v49 }
   0xd   :  { %699 = vmatpush3.bf16.msra.mxu0 %v698_v33  ;;  %v734_v54 = vpack.c.bf16 %v62_v48, %v61_v47  ;;  %v31_v56 = vld [vmem:[%s1204_s1 + $0x40] sm:$0xff]  ;;  %v32_v57 = vld [vmem:[%s1204_s1 + $0x48] sm:$0xff]  ;;  %v736_v61 = vpack.c.bf16 %v80_v53, %v79_v52  ;;  %v49_v63 = vld [vmem:[%s1204_s1 + $0xd0] sm:$0xff] }
   0xe   :  { %701 = vmatprep.subr.bf16.mxu0 %v700_v39  ;;  %v63_v58 = vld [vmem:[%s1204_s1 + $0x140] sm:$0xff]  ;;  %v64_v62 = vld [vmem:[%s1204_s1 + $0x148] sm:$0xff]  ;;  %v50_v0 = vld [vmem:[%s1204_s1 + $0xd8] sm:$0xff]  ;;  %v706_v3 = vpack.c.bf16 %v32_v57, %v31_v56 }
   0xf   :  { %731 = vmatpush3.bf16.msra.mxu1 %v730_v38  ;;  %v81_v1 = vld [vmem:[%s1204_s1 + $0x1d0] sm:$0xff]  ;;  %v82_v2 = vld [vmem:[%s1204_s1 + $0x1d8] sm:$0xff]  ;;  %v738_v5 = vpack.c.bf16 %v64_v62, %v63_v58  ;;  %v708_v6 = vpack.c.bf16 %v50_v0, %v49_v63  ;;  %v51_v12 = vld [vmem:[%s1204_s1 + $0xe0] sm:$0xff] }
  0x10   :  { %733 = vmatprep.subr.bf16.mxu1 %v732_v46  ;;  %v33_v4 = vld [vmem:[%s1204_s1 + $0x50] sm:$0xff]  ;;  %v34_v7 = vld [vmem:[%s1204_s1 + $0x58] sm:$0xff]  ;;  %v740_v11 = vpack.c.bf16 %v82_v2, %v81_v1  ;;  %v52_v13 = vld [vmem:[%s1204_s1 + $0xe8] sm:$0xff] }
  0x11   :  { %703 = vmatpush3.bf16.msra.mxu0 %v702_v51  ;;  %v65_v8 = vld [vmem:[%s1204_s1 + $0x150] sm:$0xff]  ;;  %v66_v9 = vld [vmem:[%s1204_s1 + $0x158] sm:$0xff]  ;;  %v83_v14 = vld [vmem:[%s1204_s1 + $0x1e0] sm:$0xff]  ;;  %v710_v16 = vpack.c.bf16 %v34_v7, %v33_v4  ;;  %v712_v19 = vpack.c.bf16 %v52_v13, %v51_v12 }
  0x12   :  { %705 = vmatprep.subr.bf16.mxu0 %v704_v55  ;;  %v84_v15 = vld [vmem:[%s1204_s1 + $0x1e8] sm:$0xff]  ;;  %v742_v17 = vpack.c.bf16 %v66_v9, %v65_v8  ;;  %v21_v18 = vld [vmem:[%s1203_s0] sm:$0xff]  ;;  %v53_v27 = vld [vmem:[%s1204_s1 + $0xf0] sm:$0xff] }
  0x13   :  { %735 = vmatpush3.bf16.msra.mxu1 %v734_v54  ;;  %v35_v20 = vld [vmem:[%s1204_s1 + $0x60] sm:$0xff]  ;;  %v36_v21 = vld [vmem:[%s1204_s1 + $0x68] sm:$0xff]  ;;  %v137_v23 = vrot.slane %v21_v18, %v1003_v10  ;;  %v130_v24 = vcombine.high %v21_v18, %v21_v18  ;;  %v744_v25 = vpack.c.bf16 %v84_v15, %v83_v14  ;;  %v54_v28 = vld [vmem:[%s1204_s1 + $0xf8] sm:$0xff] }
  0x14   :  { %737 = vmatprep.subr.bf16.mxu1 %v736_v61  ;;  %v67_v22 = vld [vmem:[%s1204_s1 + $0x160] sm:$0xff]  ;;  %v68_v26 = vld [vmem:[%s1204_s1 + $0x168] sm:$0xff]  ;;  %v85_v29 = vld [vmem:[%s1204_s1 + $0x1f0] sm:$0xff]  ;;  %v714_v33 = vpack.c.bf16 %v36_v21, %v35_v20  ;;  %v716_v35 = vpack.c.bf16 %v54_v28, %v53_v27 }
  0x15   :  { %707 = vmatpush3.bf16.msra.mxu0 %v706_v3  ;;  %v86_v30 = vld [vmem:[%s1204_s1 + $0x1f8] sm:$0xff]  ;;  %v145_v31 = vcombine.high %v137_v23, %v137_v23  ;;  %v144_v32 = vrot.slane %v130_v24, %v1003_v10  ;;  %v746_v34 = vpack.c.bf16 %v68_v26, %v67_v22  ;;  %v37_v36 = vld [vmem:[%s1204_s1 + $0x70] sm:$0xff]  ;;  %v103_v42 = vld [vmem:[%s1204_s1 + $0x280] sm:$0xff] }
  0x16   :  { %709 = vmatprep.subr.bf16.mxu0 %v708_v6  ;;  %v38_v37 = vld [vmem:[%s1204_s1 + $0x78] sm:$0xff]  ;;  %v69_v38 = vld [vmem:[%s1204_s1 + $0x170] sm:$0xff]  ;;  %v748_v40 = vpack.c.bf16 %v86_v30, %v85_v29  ;;  %v104_v43 = vld [vmem:[%s1204_s1 + $0x288] sm:$0xff] }
  0x17   :  { %739 = vmatpush3.bf16.msra.mxu1 %v738_v5  ;;  %v146_v39 = vcombine.high %v144_v32, %v144_v32  ;;  %236 = vmatprep.mubr.f32.mxu0 %v145_v31  ;;  %v70_v41 = vld [vmem:[%s1204_s1 + $0x178] sm:$0xff]  ;;  %v718_v44 = vpack.c.bf16 %v38_v37, %v37_v36  ;;  %v752_v46 = vpack.c.bf16 %v104_v43, %v103_v42  ;;  %v87_v47 = vld [vmem:[%s1204_s1 + $0x200] sm:$0xff]  ;;  %v88_v48 = vld [vmem:[%s1204_s1 + $0x208] sm:$0xff] }
  0x18   :  { %741 = vmatprep.subr.bf16.mxu1 %v740_v11  ;;  %v750_v45 = vpack.c.bf16 %v70_v41, %v69_v38  ;;  %v105_v49 = vld [vmem:[%s1204_s1 + $0x290] sm:$0xff]  ;;  %v106_v50 = vld [vmem:[%s1204_s1 + $0x298] sm:$0xff]  ;;  %v754_v51 = vpack.c.bf16 %v88_v48, %v87_v47  ;;  %v22_v53 = vld [vmem:[%s1203_s0 + $0x8] sm:$0x3f] }
  0x19   :  { %711 = vmatpush3.bf16.msra.mxu0 %v710_v16  ;;  %306 = vmatprep.mubr.f32.mxu1 %v146_v39  ;;  %v89_v52 = vld [vmem:[%s1204_s1 + $0x210] sm:$0xff]  ;;  %v119_v54 = vld [vmem:[%s1204_s1 + $0x300] sm:$0xff]  ;;  %v756_v55 = vpack.c.bf16 %v106_v50, %v105_v49  ;;  %v90_v56 = vld [vmem:[%s1204_s1 + $0x218] sm:$0xff]  ;;  %v147_v57 = vcombine.high %v22_v53, %v22_v53  ;;  %v1089_v58 = vrot.slane %v22_v53, %v1003_v10 }
  0x1a   :  { %713 = vmatprep.subr.bf16.mxu0 %v712_v19  ;;  %v120_v59 = vld [vmem:[%s1204_s1 + $0x308] sm:$0xff] }
  0x1b   :  { %743 = vmatpush3.bf16.msra.mxu1 %v742_v17 }
  0x1c   :  { %745 = vmatprep.subr.bf16.mxu1 %v744_v25 }
  0x1d   :  { %715 = vmatpush3.bf16.msra.mxu0 %v714_v33 }
  0x1e   :  { %717 = vmatprep.subr.bf16.mxu0 %v716_v35 }
  0x1f   :  { %747 = vmatpush3.bf16.msra.mxu1 %v746_v34 }
  0x20   :  { %749 = vmatprep.subr.bf16.mxu1 %v748_v40 }
  0x21   :  { %719 = vmatpush3.bf16.msra.mxu0 %v718_v44 }
  0x22   :  { %753 = vmatprep.subr.bf16.mxu0 %v752_v46 }
  0x23   :  { %751 = vmatpush3.bf16.msra.mxu1 %v750_v45 }
  0x24   :  { %10 = vsyncpa [#allocation3], 0  ;;  %v107_v60 = vld [vmem:[%s1204_s1 + $0x2a0] sm:$0xff]  ;;  %v108_v61 = vld [vmem:[%s1204_s1 + $0x2a8] sm:$0xff]  ;;  %v825_v62 = vmov 0.0|0.0   ;;  %v785_v63 = vpack.c.bf16 %v120_v59, %v119_v54  ;;  %237 = vmatmul.mubr.f32.vlgmr.msra.gmra.mrb[0].mxu0 %v137_v23  ;;  %v162_v0 = vcombine.high %v1089_v58, %v1089_v58  ;;  %v758_v1 = vpack.c.bf16 %v90_v56, %v89_v52 }
  0x25   :  { %784 = vmatprep.subr.bf16.mxu1 %v825_v62  ;;  %755 = vmatpush3.bf16.msra.mxu0 %v754_v51  ;;  %v760_v2 = vpack.c.bf16 %v108_v61, %v107_v60  ;;  %v91_v3 = vld [vmem:[%s1204_s1 + $0x220] sm:$0xff]  ;;  %v92_v4 = vld [vmem:[%s1204_s1 + $0x228] sm:$0xff]  ;;  %v161_v5 = vrot.slane %v147_v57, %v1003_v10  ;;  %v109_v6 = vld [vmem:[%s1204_s1 + $0x2b0] sm:$0xff]  ;;  %vm826_vm0 = vmmov 0   ;;  %v827_v8 = vmov 0.0  }
  0x26   :  { %307 = vmatmul.mubr.f32.vlgmr.msra.gmra.mrb[0].mxu1 %v144_v32  ;;  %757 = vmatprep.subr.bf16.mxu0 %v756_v55  ;;  %v110_v7 = vld [vmem:[%s1204_s1 + $0x2b8] sm:$0xff]  ;;  %vm169_vm1 = vcmask 130048   ;;  %v762_v9 = vpack.c.bf16 %v92_v4, %v91_v3  ;;  %v93_v11 = vld [vmem:[%s1204_s1 + $0x230] sm:$0xff]  ;;  %v111_v13 = vld [vmem:[%s1204_s1 + $0x2c0] sm:$0xff]  ;;  %vm464_vm2 = vcmask 261120  }
  0x27   :  { %376 = vmatprep.mubr.f32.mxu0 %v162_v0  ;;  %786 = vmatpush3.bf16.msra.mxu1 %v785_v63  ;;  %v764_v10 = vpack.c.bf16 %v110_v7, %v109_v6  ;;  %v94_v12 = vld [vmem:[%s1204_s1 + $0x238] sm:$0xff]  ;;  %v112_v14 = vld [vmem:[%s1204_s1 + $0x2c8] sm:$0xff]  ;;  %v95_v17 = vld [vmem:[%s1204_s1 + $0x240] sm:$0xff] }
  0x28   :  { %674 = vmatprep.mubr.msk.f32.mxu1 %vm826_vm0, %v827_v8  ;;  %787 = vmatprep.subr.bf16.mxu1 %v825_v62  ;;  %v766_v15 = vpack.c.bf16 %v94_v12, %v93_v11  ;;  %v768_v16 = vpack.c.bf16 %v112_v14, %v111_v13  ;;  %v96_v18 = vld [vmem:[%s1204_s1 + $0x248] sm:$0xff]  ;;  %v113_v19 = vld [vmem:[%s1204_s1 + $0x2d0] sm:$0xff]  ;;  %v114_v20 = vld [vmem:[%s1204_s1 + $0x2d8] sm:$0xff] }
  0x29   :  { %759 = vmatpush3.bf16.msra.mxu0 %v758_v1  ;;  %v770_v21 = vpack.c.bf16 %v96_v18, %v95_v17  ;;  %v772_v22 = vpack.c.bf16 %v114_v20, %v113_v19  ;;  %v97_v23 = vld [vmem:[%s1204_s1 + $0x250] sm:$0xff]  ;;  %v98_v24 = vld [vmem:[%s1204_s1 + $0x258] sm:$0xff]  ;;  %v115_v25 = vld [vmem:[%s1204_s1 + $0x2e0] sm:$0xff] }
  0x2a   :  { %761 = vmatprep.subr.bf16.mxu0 %v760_v2  ;;  %675 = vmatmul.mubr.msk.f32.vlgmr.msra.gmra.mrb[2].mxu1 %vm169_vm1, %v161_v5  ;;  %v116_v26 = vld [vmem:[%s1204_s1 + $0x2e8] sm:$0xff]  ;;  %v774_v27 = vpack.c.bf16 %v98_v24, %v97_v23  ;;  %v99_v29 = vld [vmem:[%s1204_s1 + $0x260] sm:$0xff]  ;;  %v117_v31 = vld [vmem:[%s1204_s1 + $0x2f0] sm:$0xff] }
  0x2b   :  { %685 = vmatprep.mubr.msk.f32.mxu1 %vm826_vm0, %v827_v8  ;;  %v776_v28 = vpack.c.bf16 %v116_v26, %v115_v25  ;;  %v100_v30 = vld [vmem:[%s1204_s1 + $0x268] sm:$0xff]  ;;  %v118_v32 = vld [vmem:[%s1204_s1 + $0x2f8] sm:$0xff]  ;;  %v101_v35 = vld [vmem:[%s1204_s1 + $0x270] sm:$0xff] }
  0x2c   :  { %v778_v33 = vpack.c.bf16 %v100_v30, %v99_v29  ;;  %v780_v34 = vpack.c.bf16 %v118_v32, %v117_v31  ;;  %v102_v36 = vld [vmem:[%s1204_s1 + $0x278] sm:$0xff]  ;;  %v453_v38 = vld [vmem:[%s1206_s3] sm:$0xff]  ;;  %v454_v39 = vld [vmem:[%s1206_s3 + $0x8] sm:$0xff] }
  0x2d   :  { %763 = vmatpush3.bf16.msra.mxu0 %v762_v9  ;;  %v782_v37 = vpack.c.bf16 %v102_v36, %v101_v35  ;;  %v788_v40 = vpack.c.bf16 %v454_v39, %v453_v38  ;;  %v455_v41 = vld [vmem:[%s1206_s3 + $0x10] sm:$0xff]  ;;  %v456_v42 = vld [vmem:[%s1206_s3 + $0x18] sm:$0xff]  ;;  %v553_v45 = vld [vmem:[%s1205_s2] ss:$0 sm:$0xff]  ;;  %s828_s2 = smov [#allocation2]  }
  0x2e   :  { %765 = vmatprep.subr.bf16.mxu0 %v764_v10  ;;  %v791_v43 = vpack.c.bf16 %v456_v42, %v455_v41  ;;  %v555_v61 = vld [vmem:[%s1207_s4] ss:$0 sm:$0xff]  ;;  %s545_s25 = sshll.u32 %s828_s2, 4  ;;  %s546_s25 = int_to_ptr.vmem [resolvable:$true] %s545_s25 }
  0x2f   :  { %789 = vmatpush3.bf16.msra.mxu1 %v788_v40  ;;  %s800_s26 = scalar_lea.vmem %s546_s25, 32  ;;  %p805_p1 = scmp.lt.s32.totalorder %s546_s25, %s546_s25 }
  0x30   :  { %790 = vmatprep.subr.bf16.mxu1 %v825_v62  ;;  %p801_p0 = scmp.ne.s32.totalorder %s546_s25, %s800_s26  ;;  %p806_p2 = scmp.lt.s32.totalorder %s800_s26, %s800_s26 }
  0x31   :  { %767 = vmatpush3.bf16.msra.mxu0 %v766_v15 }
  0x32   :  { %769 = vmatprep.subr.bf16.mxu0 %v768_v16  ;;  %p807_p3 = por %p806_p2, %p805_p1 }
  0x33   :  { %792 = vmatpush3.bf16.msra.mxu1 %v791_v43 }
  0x34   :  { %p808_p4 = pnand %p807_p3, %p801_p0 }
  0x35   :  { %771 = vmatpush3.bf16.msra.mxu0 %v770_v21 }
  0x36   :  { %773 = vmatprep.subr.bf16.mxu0 %v772_v22 }
  0x39   :  { %775 = vmatpush3.bf16.msra.mxu0 %v774_v27 }
  0x3a   :  { %777 = vmatprep.subr.bf16.mxu0 %v776_v28 }
  0x3d   :  { %779 = vmatpush3.bf16.msra.mxu0 %v778_v33 }
  0x3e   :  { %781 = vmatprep.subr.bf16.mxu0 %v780_v34 }
  0x41   :  { %783 = vmatpush3.bf16.msra.mxu0 %v782_v37 }
  0x44   :  { %377 = vmatmul.mubr.f32.vlgmr.msra.gmra.mrb[2].mxu0 %v1089_v58 }
  0xf7   :  { %v589_v44 = vpop.f32.mrb[0].mxu0 }
  0xf8   :  { %v590_v46 = vpop.f32.mrb[1].mxu0 }
  0xf9   :  { %v624_v47 = vpop.f32.mrb[0].mxu1  ;;  %v591_v48 = vadd.f32 %v590_v46, %v589_v44 }
  0xfa   :  { %v625_v49 = vpop.f32.mrb[1].mxu1 }
  0xfb   :  { %v626_v50 = vadd.f32 %v625_v49, %v624_v47  ;;  %v239_v51 = vadd.f32 %v591_v48, %v553_v45 }
  0xfd   :  { %v309_v52 = vadd.f32 %v626_v50, %v239_v51  ;;  %v448_v53 = vpop.f32.mrb[2].mxu1 }
  0xfe   :  { %v676_v54 = vpop.f32.mrb[3].mxu1 }
 0x117   :  { %v659_v55 = vpop.f32.mrb[2].mxu0 }
 0x118   :  { %v660_v56 = vpop.f32.mrb[3].mxu0 }
 0x119   :  { %v661_v57 = vadd.f32 %v660_v56, %v659_v55 }
 0x11b   :  { %v379_v58 = vadd.f32 %v661_v57, %v309_v52 }
 0x11d   :  { %v449_v59 = vadd.f32 %v448_v53, %v379_v58 }
 0x11f   :  { %v452_v60 = vmax.f32 %v449_v59, 0.0 }
 0x121   :  { %686 = vmatmul.mubr.msk.f32.vlgmr.msra.gmra.mrb[4].mxu1 %vm464_vm2, %v452_v60 }
 0x1f4   :  { %v534_v62 = vpop.f32.mrb[4].mxu1 }
 0x1f5   :  { %v535_v63 = vadd.f32 %v555_v61, %v534_v62  ;;  %v687_v0 = vpop.f32.mrb[5].mxu1 }
 0x1f7   :  { %538 = vst [vmem:[#allocation2] sm:$0x3] %v535_v63 }
 0x1f8   :  { %811 = shalt.err (!%p808_p4)
}
 0x1f9   :  { %s812_s29 = scalar_lea.hbm %s1208_s5, 32 }
 0x1fa   :  { %p813_p5 = scmp.ne.s32.totalorder %s1208_s5, %s812_s29  ;;  %p816_p6 = scmp.lt.u32.totalorder %s812_s29, %s1208_s5 }
 0x1fc   :  { %p818_p7 = pnand %p816_p6, %p813_p5 }
 0x1fe   :  { %821 = shalt.err (!%p818_p7)
}
 0x1ff   :  { %548 = dma.vmem_to_hbm [thread:$0]  %s546_s25, 32, %s1208_s5, [#allocation3]  }
 0x200   :  { %822 = dma.done.wait [#allocation3], 32  }
 0x201   :  { %823 = vsyncadd [#allocation3], 4294967264 }
 0x202   :  { %552 = vsyncpa [#allocation3], 1 }

</bundles_post_ra>
